<compile_context>
chip_gen: v5e
topology: v5e:2x2
jax: 0.10.0
libtpu: 0.0.40
codegen_flags: <defaults>
</compile_context>

<pallas_src>
import functools

import jax
import jax.numpy as jnp
from jax.experimental import pallas as pl
from jax.experimental.pallas import tpu as pltpu


def _round_up(n, m):
    return ((n + m - 1) // m) * m


def _vmem_budget_bytes():
    """~80% of per-core VMEM (~51 MiB v7x, ~102 MiB v5e/v6e); leaves headroom."""
    try:
        cap = int(pltpu.get_tpu_info().vmem_capacity_bytes)
    except Exception:
        cap = 64 << 20  # conservative: assume v7x-sized VMEM if the query fails
    return int(cap * 0.8)


def _choose_row_tile(rows, row_tile):
    """Balanced M tiles (no nearly-empty tail tile), >=2 tiles when rows allow
    so both v7x TensorCores get work; tiles are 16-aligned for bf16 packing."""
    n_m = max(1, pl.cdiv(rows, row_tile))
    if rows > 32:
        n_m = max(n_m, 2)
    tile = _round_up(pl.cdiv(rows, n_m), 16)
    return min(tile, _round_up(rows, 8))


def _choose_h_tile(D, H, budget):
    """Largest H tile (multiple of 128 dividing H) whose weight slabs fit VMEM."""
    if 4 * D * H <= 0.6 * budget or H % 128 != 0:
        return H  # both bf16 weights fully resident (the common case)
    # Tiled-H path: per-step weight slabs are double-buffered -> ~8*D*th bytes.
    max_th = max(128, (int(0.5 * budget) // (8 * D)) // 128 * 128)
    units = H // 128
    best = 1
    for k in range(1, units + 1):
        if units % k == 0 and k * 128 <= max_th:
            best = k
    return best * 128


def _mlp_kernel(x_ref, w1_ref, b1_ref, w2_ref, b2_ref, o_ref, acc_ref):
    j = pl.program_id(1)  # H-slice index (1 slice when weights fit resident)

    @pl.when(j == 0)
    def _init():
        acc_ref[...] = jnp.zeros_like(acc_ref)

    # fc1 on this H slice. Cast the activation tile to bf16 on the VPU here
    # (free filler under the MXU) instead of a separate wrapper-side HBM pass.
    xb = x_ref[...].astype(jnp.bfloat16)
    h = jnp.dot(xb, w1_ref[...], preferred_element_type=jnp.float32)
    h = jax.nn.gelu(h + b1_ref[...], approximate=True)  # tanh GELU -> EUP slot
    # TODO(synk): dropout(p=0.4) omitted — identity in eval mode (stochastic in train).

    # fc2 partial product for this H slice, accumulated in f32.
    acc_ref[...] += jnp.dot(h.astype(jnp.bfloat16), w2_ref[...],
                            preferred_element_type=jnp.float32)

    @pl.when(j == pl.num_programs(1) - 1)
    def _finalize():
        o = jax.nn.gelu(acc_ref[...] + b2_ref[...], approximate=True)
        o_ref[...] = o.astype(o_ref.dtype)


@functools.partial(
    jax.jit,
    static_argnames=("row_tile", "h_tile", "out_dtype", "single_buffer_weights"))
def mlp_forward(x, w1, b1, w2, b2, *, row_tile=256, h_tile=None, out_dtype=None,
                single_buffer_weights=True):
    """x: (B, S, D); w1: (D, H); b1: (1, H) or (H,); w2: (H, D); b2: (1, D) or (D,)."""
    B, S, D = x.shape
    H = w1.shape[1]
    rows = B * S
    out_dtype = x.dtype if out_dtype is None else out_dtype

    # Activations are passed in their input dtype (cast to bf16 inside the
    # kernel); weights in bf16 for the MXU (ideally stored bf16 by the caller).
    x2d = x.reshape(rows, D)
    w1b = w1 if w1.dtype == jnp.bfloat16 else w1.astype(jnp.bfloat16)
    w2b = w2 if w2.dtype == jnp.bfloat16 else w2.astype(jnp.bfloat16)
    b1f = b1.reshape(1, H).astype(jnp.float32)
    b2f = b2.reshape(1, D).astype(jnp.float32)

    vmem_budget = _vmem_budget_bytes()
    tile = _choose_row_tile(rows, row_tile)
    th = h_tile if h_tile is not None else _choose_h_tile(D, H, vmem_budget)
    if not (th == H or (0 < th <= H and th % 128 == 0 and H % th == 0)):
        raise ValueError(f"h_tile must divide H and be a multiple of 128, got {th} (H={H})")
    n_h = H // th
    n_m = pl.cdiv(rows, tile)

    const_weights = (n_h == 1)
    w_mode = pl.Buffered(1) if (single_buffer_weights and const_weights) else None
    b2_mode = pl.Buffered(1) if single_buffer_weights else None

    # VMEM footprint -> limit (capped at ~80% of physical per-core VMEM).
    x_bpe = jnp.dtype(x.dtype).itemsize
    o_bpe = jnp.dtype(out_dtype).itemsize
    w_bufs = 1 if (single_buffer_weights and const_weights) else 2
    vmem_bytes = (
        2 * tile * D * x_bpe              # x tiles (double-buffered)
        + 2 * tile * D * o_bpe            # output tiles (double-buffered)
        + w_bufs * 2 * (D * th + th * D)  # W1/W2 slabs (bf16)
        + 2 * (th + D) * 4                # biases (f32)
        + tile * th * 4                   # fc1 intermediate (f32)
        + tile * D * 4                    # fc2 accumulator scratch (f32)
    )
    vmem_limit = int(min(max(2 * vmem_bytes, 32 << 20), vmem_budget))

    cost = pl.CostEstimate(
        flops=4 * rows * D * H,                       # two matmuls
        transcendentals=rows * (H + D),               # tanh GELU
        bytes_accessed=rows * D * (x_bpe + o_bpe) + 4 * D * H + 4 * (H + D),
    )

    out2d = pl.pallas_call(
        _mlp_kernel,
        out_shape=jax.ShapeDtypeStruct((rows, D), out_dtype),
        grid_spec=pltpu.PrefetchScalarGridSpec(
            num_scalar_prefetch=0,
            grid=(n_m, n_h),
            in_specs=[
                pl.BlockSpec((tile, D), lambda i, j: (i, 0)),                        # x tile
                pl.BlockSpec((D, th), lambda i, j: (0, j), pipeline_mode=w_mode),    # W1
                pl.BlockSpec((1, th), lambda i, j: (0, j), pipeline_mode=w_mode),    # b1
                pl.BlockSpec((th, D), lambda i, j: (j, 0), pipeline_mode=w_mode),    # W2
                pl.BlockSpec((1, D), lambda i, j: (0, 0), pipeline_mode=b2_mode),    # b2
            ],
            out_specs=pl.BlockSpec((tile, D), lambda i, j: (i, 0)),
            scratch_shapes=[pltpu.VMEM((tile, D), jnp.float32)],
        ),
        compiler_params=pltpu.CompilerParams(
            dimension_semantics=("parallel", "arbitrary"),
            vmem_limit_bytes=vmem_limit),
        cost_estimate=cost,
    )(x2d, w1b, b1f, w2b, b2f)

    return out2d.reshape(B, S, D)


def init_mlp_params(key, hidden_states, output_states, dtype=jnp.float32):
    """Deterministic init mimicking torch.nn.Linear (uniform +/- 1/sqrt(fan_in))."""
    k1, k2, k3, k4 = jax.random.split(key, 4)
    bound1 = 1.0 / (output_states ** 0.5)   # fc1 fan_in = output_states
    bound2 = 1.0 / (hidden_states ** 0.5)   # fc2 fan_in = hidden_states
    # Stored transposed relative to torch: (in_features, out_features).
    w1 = jax.random.uniform(k1, (output_states, hidden_states), dtype,
                            minval=-bound1, maxval=bound1)
    b1 = jax.random.uniform(k2, (1, hidden_states), dtype,
                            minval=-bound1, maxval=bound1)
    w2 = jax.random.uniform(k3, (hidden_states, output_states), dtype,
                            minval=-bound2, maxval=bound2)
    b2 = jax.random.uniform(k4, (1, output_states), dtype,
                            minval=-bound2, maxval=bound2)
    return w1, b1, w2, b2


if __name__ == "__main__":
    # Small shapes consistent with the module: tokens of width output_states.
    batch, seq = 2, 8
    hidden_states, output_states = 256, 128

    key = jax.random.PRNGKey(0)
    kx, kp = jax.random.split(key)
    x = jax.random.normal(kx, (batch, seq, output_states), jnp.float32)
    w1, b1, w2, b2 = init_mlp_params(kp, hidden_states, output_states)

    single_buf = True
    try:
        out = jax.block_until_ready(mlp_forward(x, w1, b1, w2, b2))
    except Exception:
        # Fallback for jax builds without BlockSpec(pipeline_mode=...) support.
        single_buf = False
        out = jax.block_until_ready(
            mlp_forward(x, w1, b1, w2, b2, single_buffer_weights=False))
    assert out.shape == (batch, seq, output_states)

    # Exercise the H-tiled accumulator path (used when weights don't fit
    # resident in VMEM) and check it agrees with the fused path.
    out_tiled = jax.block_until_ready(
        mlp_forward(x, w1, b1, w2, b2, h_tile=128, single_buffer_weights=single_buf))
    assert jnp.allclose(out, out_tiled, atol=1e-3, rtol=1e-3)

    # Reference 1: numerics matched to the kernel (bf16 operands, f32
    # accumulation, tanh GELU, eval-mode dropout = identity).
    xr = x.reshape(-1, output_states).astype(jnp.bfloat16)
    h = jnp.dot(xr, w1.astype(jnp.bfloat16),
                preferred_element_type=jnp.float32) + b1
    h = jax.nn.gelu(h, approximate=True)
    o = jnp.dot(h.astype(jnp.bfloat16), w2.astype(jnp.bfloat16),
                preferred_element_type=jnp.float32) + b2
    o = jax.nn.gelu(o, approximate=True)
    ref_matched = o.reshape(batch, seq, output_states).astype(x.dtype)
    assert jnp.allclose(out, ref_matched, atol=1e-2, rtol=1e-2)

    # Reference 2: full-precision exact-GELU torch-equivalent, loose tolerance
    # (bf16 matmul + tanh GELU vs f32 + erf GELU).
    ref_f32 = jax.nn.gelu(x @ w1 + b1[0], approximate=False)
    ref_f32 = jax.nn.gelu(ref_f32 @ w2 + b2[0], approximate=False)
    assert jnp.allclose(out, ref_f32, atol=6e-2, rtol=6e-2)

    print("KERNEL_OK")
</pallas_src>

<mosaic_0001>
module attributes {stable_mosaic.version = 11 : i64} {
  func.func @_mlp_kernel(%arg0: i32, %arg1: i32, %arg2: memref<16x128xf32, #tpu.memory_space<vmem>>, %arg3: memref<128x256xbf16, #tpu.memory_space<vmem>>, %arg4: memref<1x256xf32, #tpu.memory_space<vmem>>, %arg5: memref<256x128xbf16, #tpu.memory_space<vmem>>, %arg6: memref<1x128xf32, #tpu.memory_space<vmem>>, %arg7: memref<16x128xf32, #tpu.memory_space<vmem>>, %arg8: memref<16x128xf32, #tpu.memory_space<vmem>>) attributes {dimension_semantics = [#tpu.dimension_semantics<parallel>, #tpu.dimension_semantics<arbitrary>], iteration_bounds = array<i64: 1, 1>, scalar_prefetch = 0 : i64, scratch_operands = 1 : i64, tpu.core_type = #tpu.core_type<tc>, window_params = [{transform_indices = @transform_0, window_bounds = array<i64: 16, 128>}, {pipeline_mode = #tpu.pipeline_mode<synchronous>, transform_indices = @transform_1, window_bounds = array<i64: 128, 256>}, {pipeline_mode = #tpu.pipeline_mode<synchronous>, transform_indices = @transform_2, window_bounds = array<i64: 1, 256>}, {pipeline_mode = #tpu.pipeline_mode<synchronous>, transform_indices = @transform_3, window_bounds = array<i64: 256, 128>}, {pipeline_mode = #tpu.pipeline_mode<synchronous>, transform_indices = @transform_4, window_bounds = array<i64: 1, 128>}, {transform_indices = @transform_5, window_bounds = array<i64: 16, 128>}]} {
    %c0_i32 = arith.constant 0 : i32
    %0 = arith.cmpi eq, %arg1, %c0_i32 : i32
    %1 = arith.extui %0 : i1 to i32
    %c0_i32_0 = arith.constant 0 : i32
    %2 = arith.cmpi ne, %1, %c0_i32_0 : i32
    scf.if %2 {
      %cst_19 = arith.constant 0.000000e+00 : f32
      %32 = vector.broadcast %cst_19 : f32 to vector<16x128xf32>
      %c0_20 = arith.constant 0 : index
      %c0_21 = arith.constant 0 : index
      %33 = vector.load %arg8[%c0_20, %c0_21] : memref<16x128xf32, #tpu.memory_space<vmem>>, vector<16x128xf32>
      tpu.vector_store %arg8[%c0_20, %c0_21], %32 {strides = array<i32>} : memref<16x128xf32, #tpu.memory_space<vmem>>, vector<16x128xf32>,
    } else {
    }
    %c0 = arith.constant 0 : index
    %c0_1 = arith.constant 0 : index
    %3 = vector.load %arg2[%c0, %c0_1] : memref<16x128xf32, #tpu.memory_space<vmem>>, vector<16x128xf32>
    %4 = arith.truncf %3 : vector<16x128xf32> to vector<16x128xbf16>
    %c0_2 = arith.constant 0 : index
    %c0_3 = arith.constant 0 : index
    %5 = vector.load %arg3[%c0_2, %c0_3] : memref<128x256xbf16, #tpu.memory_space<vmem>>, vector<128x256xbf16>
    %cst = arith.constant dense<0.000000e+00> : vector<16x256xf32>
    %6 = tpu.matmul %4, %5, %cst {dimension_numbers = #tpu.dot_dimension_numbers<[1], [0], [0], [1], [0, 0, 1, 1], [], []>} : vector<16x128xbf16>, vector<128x256xbf16>, vector<16x256xf32> -> vector<16x256xf32>
    %c0_4 = arith.constant 0 : index
    %c0_5 = arith.constant 0 : index
    %7 = vector.load %arg4[%c0_4, %c0_5] : memref<1x256xf32, #tpu.memory_space<vmem>>, vector<1x256xf32>
    %8 = vector.broadcast %7 : vector<1x256xf32> to vector<16x256xf32>
    %9 = arith.addf %6, %8 : vector<16x256xf32>
    %10 = arith.mulf %9, %9 : vector<16x256xf32>
    %11 = arith.mulf %9, %10 : vector<16x256xf32>
    %cst_6 = arith.constant 4.471500e-02 : f32
    %12 = vector.broadcast %cst_6 : f32 to vector<16x256xf32>
    %13 = arith.mulf %12, %11 : vector<16x256xf32>
    %14 = arith.addf %9, %13 : vector<16x256xf32>
    %cst_7 = arith.constant 0.797884583 : f32
    %15 = vector.broadcast %cst_7 : f32 to vector<16x256xf32>
    %16 = arith.mulf %15, %14 : vector<16x256xf32>
    %17 = math.tanh %16 : vector<16x256xf32>
    %cst_8 = arith.constant 1.000000e+00 : f32
    %18 = vector.broadcast %cst_8 : f32 to vector<16x256xf32>
    %19 = arith.addf %18, %17 : vector<16x256xf32>
    %cst_9 = arith.constant 5.000000e-01 : f32
    %20 = vector.broadcast %cst_9 : f32 to vector<16x256xf32>
    %21 = arith.mulf %20, %19 : vector<16x256xf32>
    %22 = arith.mulf %9, %21 : vector<16x256xf32>
    %c0_10 = arith.constant 0 : index
    %c0_11 = arith.constant 0 : index
    %23 = vector.load %arg8[%c0_10, %c0_11] : memref<16x128xf32, #tpu.memory_space<vmem>>, vector<16x128xf32>
    %24 = arith.truncf %22 : vector<16x256xf32> to vector<16x256xbf16>
    %c0_12 = arith.constant 0 : index
    %c0_13 = arith.constant 0 : index
    %25 = vector.load %arg5[%c0_12, %c0_13] : memref<256x128xbf16, #tpu.memory_space<vmem>>, vector<256x128xbf16>
    %cst_14 = arith.constant dense<0.000000e+00> : vector<16x128xf32>
    %26 = tpu.matmul %24, %25, %cst_14 {dimension_numbers = #tpu.dot_dimension_numbers<[1], [0], [0], [1], [0, 0, 1, 1], [], []>} : vector<16x256xbf16>, vector<256x128xbf16>, vector<16x128xf32> -> vector<16x128xf32>
    %27 = arith.addf %23, %26 : vector<16x128xf32>
    %c0_15 = arith.constant 0 : index
    %c0_16 = arith.constant 0 : index
    %28 = vector.load %arg8[%c0_15, %c0_16] : memref<16x128xf32, #tpu.memory_space<vmem>>, vector<16x128xf32>
    tpu.vector_store %arg8[%c0_15, %c0_16], %27 {strides = array<i32>} : memref<16x128xf32, #tpu.memory_space<vmem>>, vector<16x128xf32>,
    %c0_i32_17 = arith.constant 0 : i32
    %29 = arith.cmpi eq, %arg1, %c0_i32_17 : i32
    %30 = arith.extui %29 : i1 to i32
    %c0_i32_18 = arith.constant 0 : i32
    %31 = arith.cmpi ne, %30, %c0_i32_18 : i32
    scf.if %31 {
      %c0_19 = arith.constant 0 : index
      %c0_20 = arith.constant 0 : index
      %32 = vector.load %arg8[%c0_19, %c0_20] : memref<16x128xf32, #tpu.memory_space<vmem>>, vector<16x128xf32>
      %c0_21 = arith.constant 0 : index
      %c0_22 = arith.constant 0 : index
      %33 = vector.load %arg6[%c0_21, %c0_22] : memref<1x128xf32, #tpu.memory_space<vmem>>, vector<1x128xf32>
      %34 = vector.broadcast %33 : vector<1x128xf32> to vector<16x128xf32>
      %35 = arith.addf %32, %34 : vector<16x128xf32>
      %36 = arith.mulf %35, %35 : vector<16x128xf32>
      %37 = arith.mulf %35, %36 : vector<16x128xf32>
      %cst_23 = arith.constant 4.471500e-02 : f32
      %38 = vector.broadcast %cst_23 : f32 to vector<16x128xf32>
      %39 = arith.mulf %38, %37 : vector<16x128xf32>
      %40 = arith.addf %35, %39 : vector<16x128xf32>
      %cst_24 = arith.constant 0.797884583 : f32
      %41 = vector.broadcast %cst_24 : f32 to vector<16x128xf32>
      %42 = arith.mulf %41, %40 : vector<16x128xf32>
      %43 = math.tanh %42 : vector<16x128xf32>
      %cst_25 = arith.constant 1.000000e+00 : f32
      %44 = vector.broadcast %cst_25 : f32 to vector<16x128xf32>
      %45 = arith.addf %44, %43 : vector<16x128xf32>
      %cst_26 = arith.constant 5.000000e-01 : f32
      %46 = vector.broadcast %cst_26 : f32 to vector<16x128xf32>
      %47 = arith.mulf %46, %45 : vector<16x128xf32>
      %48 = arith.mulf %35, %47 : vector<16x128xf32>
      %c0_27 = arith.constant 0 : index
      %c0_28 = arith.constant 0 : index
      %49 = vector.load %arg7[%c0_27, %c0_28] : memref<16x128xf32, #tpu.memory_space<vmem>>, vector<16x128xf32>
      tpu.vector_store %arg7[%c0_27, %c0_28], %48 {strides = array<i32>} : memref<16x128xf32, #tpu.memory_space<vmem>>, vector<16x128xf32>,
    } else {
    }
    return
  }
  func.func @transform_0(%arg0: i32, %arg1: i32) -> (i32, i32) {
    %c0_i32 = arith.constant 0 : i32
    %c0_i32_0 = arith.constant 0 : i32
    return %arg0, %c0_i32 : i32, i32
  }
  func.func @transform_1(%arg0: i32, %arg1: i32) -> (i32, i32) {
    %c0_i32 = arith.constant 0 : i32
    %c0_i32_0 = arith.constant 0 : i32
    return %c0_i32, %arg1 : i32, i32
  }
  func.func @transform_2(%arg0: i32, %arg1: i32) -> (i32, i32) {
    %c0_i32 = arith.constant 0 : i32
    %c0_i32_0 = arith.constant 0 : i32
    return %c0_i32, %arg1 : i32, i32
  }
  func.func @transform_3(%arg0: i32, %arg1: i32) -> (i32, i32) {
    %c0_i32 = arith.constant 0 : i32
    %c0_i32_0 = arith.constant 0 : i32
    return %arg1, %c0_i32 : i32, i32
  }
  func.func @transform_4(%arg0: i32, %arg1: i32) -> (i32, i32) {
    %c0_i32 = arith.constant 0 : i32
    %c0_i32_0 = arith.constant 0 : i32
    %c0_i32_1 = arith.constant 0 : i32
    return %c0_i32, %c0_i32_0 : i32, i32
  }
  func.func @transform_5(%arg0: i32, %arg1: i32) -> (i32, i32) {
    %c0_i32 = arith.constant 0 : i32
    %c0_i32_0 = arith.constant 0 : i32
    return %arg0, %c0_i32 : i32, i32
  }
}

module attributes {stable_mosaic.version = 11 : i64} {
  func.func @_mlp_kernel(%arg0: i32, %arg1: i32, %arg2: memref<16x128xf32, #tpu.memory_space<vmem>>, %arg3: memref<128x256xbf16, #tpu.memory_space<vmem>>, %arg4: memref<1x256xf32, #tpu.memory_space<vmem>>, %arg5: memref<256x128xbf16, #tpu.memory_space<vmem>>, %arg6: memref<1x128xf32, #tpu.memory_space<vmem>>, %arg7: memref<16x128xf32, #tpu.memory_space<vmem>>, %arg8: memref<16x128xf32, #tpu.memory_space<vmem>>) attributes {dimension_semantics = [#tpu.dimension_semantics<parallel>, #tpu.dimension_semantics<arbitrary>], iteration_bounds = array<i64: 1, 1>, scalar_prefetch = 0 : i64, scratch_operands = 1 : i64, tpu.core_type = #tpu.core_type<tc>, window_params = [{transform_indices = @transform_0, window_bounds = array<i64: 16, 128>}, {transform_indices = @transform_1, window_bounds = array<i64: 128, 256>}, {transform_indices = @transform_2, window_bounds = array<i64: 1, 256>}, {transform_indices = @transform_3, window_bounds = array<i64: 256, 128>}, {pipeline_mode = #tpu.pipeline_mode<synchronous>, transform_indices = @transform_4, window_bounds = array<i64: 1, 128>}, {transform_indices = @transform_5, window_bounds = array<i64: 16, 128>}]} {
    %c0_i32 = arith.constant 0 : i32
    %0 = arith.cmpi eq, %arg1, %c0_i32 : i32
    %1 = arith.extui %0 : i1 to i32
    %c0_i32_0 = arith.constant 0 : i32
    %2 = arith.cmpi ne, %1, %c0_i32_0 : i32
    scf.if %2 {
      %cst_19 = arith.constant 0.000000e+00 : f32
      %32 = vector.broadcast %cst_19 : f32 to vector<16x128xf32>
      %c0_20 = arith.constant 0 : index
      %c0_21 = arith.constant 0 : index
      %33 = vector.load %arg8[%c0_20, %c0_21] : memref<16x128xf32, #tpu.memory_space<vmem>>, vector<16x128xf32>
      tpu.vector_store %arg8[%c0_20, %c0_21], %32 {strides = array<i32>} : memref<16x128xf32, #tpu.memory_space<vmem>>, vector<16x128xf32>,
    } else {
    }
    %c0 = arith.constant 0 : index
    %c0_1 = arith.constant 0 : index
    %3 = vector.load %arg2[%c0, %c0_1] : memref<16x128xf32, #tpu.memory_space<vmem>>, vector<16x128xf32>
    %4 = arith.truncf %3 : vector<16x128xf32> to vector<16x128xbf16>
    %c0_2 = arith.constant 0 : index
    %c0_3 = arith.constant 0 : index
    %5 = vector.load %arg3[%c0_2, %c0_3] : memref<128x256xbf16, #tpu.memory_space<vmem>>, vector<128x256xbf16>
    %cst = arith.constant dense<0.000000e+00> : vector<16x256xf32>
    %6 = tpu.matmul %4, %5, %cst {dimension_numbers = #tpu.dot_dimension_numbers<[1], [0], [0], [1], [0, 0, 1, 1], [], []>} : vector<16x128xbf16>, vector<128x256xbf16>, vector<16x256xf32> -> vector<16x256xf32>
    %c0_4 = arith.constant 0 : index
    %c0_5 = arith.constant 0 : index
    %7 = vector.load %arg4[%c0_4, %c0_5] : memref<1x256xf32, #tpu.memory_space<vmem>>, vector<1x256xf32>
    %8 = vector.broadcast %7 : vector<1x256xf32> to vector<16x256xf32>
    %9 = arith.addf %6, %8 : vector<16x256xf32>
    %10 = arith.mulf %9, %9 : vector<16x256xf32>
    %11 = arith.mulf %9, %10 : vector<16x256xf32>
    %cst_6 = arith.constant 4.471500e-02 : f32
    %12 = vector.broadcast %cst_6 : f32 to vector<16x256xf32>
    %13 = arith.mulf %12, %11 : vector<16x256xf32>
    %14 = arith.addf %9, %13 : vector<16x256xf32>
    %cst_7 = arith.constant 0.797884583 : f32
    %15 = vector.broadcast %cst_7 : f32 to vector<16x256xf32>
    %16 = arith.mulf %15, %14 : vector<16x256xf32>
    %17 = math.tanh %16 : vector<16x256xf32>
    %cst_8 = arith.constant 1.000000e+00 : f32
    %18 = vector.broadcast %cst_8 : f32 to vector<16x256xf32>
    %19 = arith.addf %18, %17 : vector<16x256xf32>
    %cst_9 = arith.constant 5.000000e-01 : f32
    %20 = vector.broadcast %cst_9 : f32 to vector<16x256xf32>
    %21 = arith.mulf %20, %19 : vector<16x256xf32>
    %22 = arith.mulf %9, %21 : vector<16x256xf32>
    %c0_10 = arith.constant 0 : index
    %c0_11 = arith.constant 0 : index
    %23 = vector.load %arg8[%c0_10, %c0_11] : memref<16x128xf32, #tpu.memory_space<vmem>>, vector<16x128xf32>
    %24 = arith.truncf %22 : vector<16x256xf32> to vector<16x256xbf16>
    %c0_12 = arith.constant 0 : index
    %c0_13 = arith.constant 0 : index
    %25 = vector.load %arg5[%c0_12, %c0_13] : memref<256x128xbf16, #tpu.memory_space<vmem>>, vector<256x128xbf16>
    %cst_14 = arith.constant dense<0.000000e+00> : vector<16x128xf32>
    %26 = tpu.matmul %24, %25, %cst_14 {dimension_numbers = #tpu.dot_dimension_numbers<[1], [0], [0], [1], [0, 0, 1, 1], [], []>} : vector<16x256xbf16>, vector<256x128xbf16>, vector<16x128xf32> -> vector<16x128xf32>
    %27 = arith.addf %23, %26 : vector<16x128xf32>
    %c0_15 = arith.constant 0 : index
    %c0_16 = arith.constant 0 : index
    %28 = vector.load %arg8[%c0_15, %c0_16] : memref<16x128xf32, #tpu.memory_space<vmem>>, vector<16x128xf32>
    tpu.vector_store %arg8[%c0_15, %c0_16], %27 {strides = array<i32>} : memref<16x128xf32, #tpu.memory_space<vmem>>, vector<16x128xf32>,
    %c0_i32_17 = arith.constant 0 : i32
    %29 = arith.cmpi eq, %arg1, %c0_i32_17 : i32
    %30 = arith.extui %29 : i1 to i32
    %c0_i32_18 = arith.constant 0 : i32
    %31 = arith.cmpi ne, %30, %c0_i32_18 : i32
    scf.if %31 {
      %c0_19 = arith.constant 0 : index
      %c0_20 = arith.constant 0 : index
      %32 = vector.load %arg8[%c0_19, %c0_20] : memref<16x128xf32, #tpu.memory_space<vmem>>, vector<16x128xf32>
      %c0_21 = arith.constant 0 : index
      %c0_22 = arith.constant 0 : index
      %33 = vector.load %arg6[%c0_21, %c0_22] : memref<1x128xf32, #tpu.memory_space<vmem>>, vector<1x128xf32>
      %34 = vector.broadcast %33 : vector<1x128xf32> to vector<16x128xf32>
      %35 = arith.addf %32, %34 : vector<16x128xf32>
      %36 = arith.mulf %35, %35 : vector<16x128xf32>
      %37 = arith.mulf %35, %36 : vector<16x128xf32>
      %cst_23 = arith.constant 4.471500e-02 : f32
      %38 = vector.broadcast %cst_23 : f32 to vector<16x128xf32>
      %39 = arith.mulf %38, %37 : vector<16x128xf32>
      %40 = arith.addf %35, %39 : vector<16x128xf32>
      %cst_24 = arith.constant 0.797884583 : f32
      %41 = vector.broadcast %cst_24 : f32 to vector<16x128xf32>
      %42 = arith.mulf %41, %40 : vector<16x128xf32>
      %43 = math.tanh %42 : vector<16x128xf32>
      %cst_25 = arith.constant 1.000000e+00 : f32
      %44 = vector.broadcast %cst_25 : f32 to vector<16x128xf32>
      %45 = arith.addf %44, %43 : vector<16x128xf32>
      %cst_26 = arith.constant 5.000000e-01 : f32
      %46 = vector.broadcast %cst_26 : f32 to vector<16x128xf32>
      %47 = arith.mulf %46, %45 : vector<16x128xf32>
      %48 = arith.mulf %35, %47 : vector<16x128xf32>
      %c0_27 = arith.constant 0 : index
      %c0_28 = arith.constant 0 : index
      %49 = vector.load %arg7[%c0_27, %c0_28] : memref<16x128xf32, #tpu.memory_space<vmem>>, vector<16x128xf32>
      tpu.vector_store %arg7[%c0_27, %c0_28], %48 {strides = array<i32>} : memref<16x128xf32, #tpu.memory_space<vmem>>, vector<16x128xf32>,
    } else {
    }
    return
  }
  func.func @transform_0(%arg0: i32, %arg1: i32) -> (i32, i32) {
    %c0_i32 = arith.constant 0 : i32
    %c0_i32_0 = arith.constant 0 : i32
    return %arg0, %c0_i32 : i32, i32
  }
  func.func @transform_1(%arg0: i32, %arg1: i32) -> (i32, i32) {
    %c0_i32 = arith.constant 0 : i32
    %c0_i32_0 = arith.constant 0 : i32
    return %c0_i32, %arg1 : i32, i32
  }
  func.func @transform_2(%arg0: i32, %arg1: i32) -> (i32, i32) {
    %c0_i32 = arith.constant 0 : i32
    %c0_i32_0 = arith.constant 0 : i32
    return %c0_i32, %arg1 : i32, i32
  }
  func.func @transform_3(%arg0: i32, %arg1: i32) -> (i32, i32) {
    %c0_i32 = arith.constant 0 : i32
    %c0_i32_0 = arith.constant 0 : i32
    return %arg1, %c0_i32 : i32, i32
  }
  func.func @transform_4(%arg0: i32, %arg1: i32) -> (i32, i32) {
    %c0_i32 = arith.constant 0 : i32
    %c0_i32_0 = arith.constant 0 : i32
    %c0_i32_1 = arith.constant 0 : i32
    return %c0_i32, %c0_i32_0 : i32, i32
  }
  func.func @transform_5(%arg0: i32, %arg1: i32) -> (i32, i32) {
    %c0_i32 = arith.constant 0 : i32
    %c0_i32_0 = arith.constant 0 : i32
    return %arg0, %c0_i32 : i32, i32
  }
}

</mosaic_0001>

<bundles_post_ra>
// kernel: mlp_forward.1
= control target key start
LH: loop header
LB: loop body
LE: loop exit
PB: predicated region body
PF: predicated region fallthrough
CT: control target
= control target key end

     0   :  { %s803_s0 = inlined_call_operand.vmem [shape: f32[16,128], index: 0, kind: input, shape index: {}]   ;;  %s804_s1 = inlined_call_operand.vmem [shape: bf16[128,256], index: 1, kind: input, shape index: {}]   ;;  %s805_s2 = inlined_call_operand.vmem [shape: f32[1,256], index: 2, kind: input, shape index: {}]   ;;  %s806_s3 = inlined_call_operand.vmem [shape: bf16[256,128], index: 3, kind: input, shape index: {}]   ;;  %s807_s4 = inlined_call_operand.vmem [shape: f32[1,128], index: 4, kind: input, shape index: {}]   ;;  %s808_s5 = inlined_call_operand.hbm [shape: f32[16,128], index: 5, kind: output, shape index: {}]  }
   0x1   :  { %v467_v0 = vld [vmem:[%s804_s1 + $0x70] sm:$0xf]  ;;  %v552_v1 = vld [vmem:[%s804_s1 + $0x74] sm:$0xf0]  ;;  %v551_v2 = vld [vmem:[%s804_s1 + $0x74] sm:$0xf] }
   0x2   :  { %v468_v3 = vor.u32 %v552_v1, %v467_v0  ;;  %v469_v4 = vld [vmem:[%s804_s1 + $0x78] sm:$0xf0]  ;;  %v459_v5 = vld [vmem:[%s804_s1 + $0x60] sm:$0xf]  ;;  %v550_v6 = vld [vmem:[%s804_s1 + $0x64] sm:$0xf0] }
   0x3   :  { %v472_v7 = vor.u32 %v551_v2, %v469_v4  ;;  %v549_v8 = vld [vmem:[%s804_s1 + $0x64] sm:$0xf]  ;;  %v461_v9 = vld [vmem:[%s804_s1 + $0x68] sm:$0xf0]  ;;  %v460_v10 = vor.u32 %v550_v6, %v459_v5  ;;  %v451_v12 = vld [vmem:[%s804_s1 + $0x50] sm:$0xf] }
   0x4   :  { %132 = vmatpush.bf16.msra.mxu0 %v468_v3  ;;  %v464_v11 = vor.u32 %v549_v8, %v461_v9  ;;  %v548_v13 = vld [vmem:[%s804_s1 + $0x54] sm:$0xf0]  ;;  %v547_v14 = vld [vmem:[%s804_s1 + $0x54] sm:$0xf]  ;;  %v453_v15 = vld [vmem:[%s804_s1 + $0x58] sm:$0xf0] }
   0x5   :  { %146 = vmatpush.bf16.msra.mxu1 %v472_v7  ;;  %v452_v16 = vor.u32 %v548_v13, %v451_v12  ;;  %v456_v17 = vor.u32 %v547_v14, %v453_v15  ;;  %v443_v18 = vld [vmem:[%s804_s1 + $0x40] sm:$0xf]  ;;  %v546_v19 = vld [vmem:[%s804_s1 + $0x44] sm:$0xf0]  ;;  %v545_v20 = vld [vmem:[%s804_s1 + $0x44] sm:$0xf] }
   0x6   :  { %v445_v21 = vld [vmem:[%s804_s1 + $0x48] sm:$0xf0]  ;;  %v444_v22 = vor.u32 %v546_v19, %v443_v18  ;;  %v435_v24 = vld [vmem:[%s804_s1 + $0x30] sm:$0xf]  ;;  %v544_v25 = vld [vmem:[%s804_s1 + $0x34] sm:$0xf0] }
   0x7   :  { %v448_v23 = vor.u32 %v545_v20, %v445_v21 }
   0x8   :  { %133 = vmatpush.bf16.msra.mxu0 %v460_v10 }
   0x9   :  { %147 = vmatpush.bf16.msra.mxu1 %v464_v11 }
   0xc   :  { %134 = vmatpush.bf16.msra.mxu0 %v452_v16 }
   0xd   :  { %148 = vmatpush.bf16.msra.mxu1 %v456_v17 }
   0xe   :  { %10 = vsyncpa [#allocation4], 0  ;;  %v543_v26 = vld [vmem:[%s804_s1 + $0x34] sm:$0xf]  ;;  %v437_v27 = vld [vmem:[%s804_s1 + $0x38] sm:$0xf0]  ;;  %v436_v28 = vor.u32 %v544_v25, %v435_v24 }
   0xf   :  { %v440_v29 = vor.u32 %v543_v26, %v437_v27  ;;  %v427_v30 = vld [vmem:[%s804_s1 + $0x20] sm:$0xf]  ;;  %v542_v31 = vld [vmem:[%s804_s1 + $0x24] sm:$0xf0]  ;;  %v541_v32 = vld [vmem:[%s804_s1 + $0x24] sm:$0xf] }
  0x10   :  { %135 = vmatpush.bf16.msra.mxu0 %v444_v22  ;;  %v429_v33 = vld [vmem:[%s804_s1 + $0x28] sm:$0xf0]  ;;  %v428_v34 = vor.u32 %v542_v31, %v427_v30  ;;  %v419_v36 = vld [vmem:[%s804_s1 + $0x10] sm:$0xf]  ;;  %v540_v37 = vld [vmem:[%s804_s1 + $0x14] sm:$0xf0] }
  0x11   :  { %149 = vmatpush.bf16.msra.mxu1 %v448_v23  ;;  %v432_v35 = vor.u32 %v541_v32, %v429_v33  ;;  %v539_v38 = vld [vmem:[%s804_s1 + $0x14] sm:$0xf]  ;;  %v421_v39 = vld [vmem:[%s804_s1 + $0x18] sm:$0xf0]  ;;  %v420_v40 = vor.u32 %v540_v37, %v419_v36  ;;  %v411_v42 = vld [vmem:[%s804_s1] sm:$0xf] }
  0x12   :  { %v424_v41 = vor.u32 %v539_v38, %v421_v39  ;;  %v538_v43 = vld [vmem:[%s804_s1 + $0x4] sm:$0xf0]  ;;  %v537_v44 = vld [vmem:[%s804_s1 + $0x4] sm:$0xf]  ;;  %v413_v45 = vld [vmem:[%s804_s1 + $0x8] sm:$0xf0] }
  0x13   :  { %v412_v46 = vor.u32 %v538_v43, %v411_v42  ;;  %v27_v47 = vld [vmem:[%s803_s0] sm:$0xff]  ;;  %v28_v48 = vld [vmem:[%s803_s0 + $0x8] sm:$0xff]  ;;  %v416_v49 = vor.u32 %v537_v44, %v413_v45  ;;  %v560_v51 = vld [vmem:[%s806_s3 + $0x38] sm:$0xff]  ;;  %s397_s19 = sshll.u32 %s808_s5, 4  ;;  %s612_s20 = smov 128   ;;  %s398_s19 = int_to_ptr.hbm [resolvable:$true] %s397_s19 }
  0x14   :  { %136 = vmatpush.bf16.msra.mxu0 %v436_v28  ;;  %v29_v50 = vpack.c.bf16 %v28_v48, %v27_v47  ;;  %v568_v52 = vld [vmem:[%s806_s3 + $0x78] sm:$0xff]  ;;  %328 = vmatpush.bf16.msra.mxu2 %v560_v51  ;;  %v559_v53 = vld [vmem:[%s806_s3 + $0x30] sm:$0xff]  ;;  %v558_v55 = vld [vmem:[%s806_s3 + $0x28] sm:$0xff]  ;;  %s613_s21 = smov 8  }
  0x15   :  { %150 = vmatpush.bf16.msra.mxu1 %v440_v29  ;;  %342 = vmatpush.bf16.msra.mxu3 %v568_v52  ;;  %v567_v54 = vld [vmem:[%s806_s3 + $0x70] sm:$0xff]  ;;  %v566_v56 = vld [vmem:[%s806_s3 + $0x68] sm:$0xff]  ;;  %v557_v57 = vld [vmem:[%s806_s3 + $0x20] sm:$0xff] }
  0x16   :  { %v565_v58 = vld [vmem:[%s806_s3 + $0x60] sm:$0xff]  ;;  %v556_v59 = vld [vmem:[%s806_s3 + $0x18] sm:$0xff]  ;;  %v555_v61 = vld [vmem:[%s806_s3 + $0x10] sm:$0xff] }
  0x17   :  { %v564_v60 = vld [vmem:[%s806_s3 + $0x58] sm:$0xff]  ;;  %v563_v62 = vld [vmem:[%s806_s3 + $0x50] sm:$0xff]  ;;  %v46_v63 = vld [vmem:[%s805_s2] sm:$0x3] }
  0x18   :  { %137 = vmatpush.bf16.msra.mxu0 %v428_v34  ;;  %329 = vmatpush.bf16.msra.mxu2 %v559_v53  ;;  %v554_v0 = vld [vmem:[%s806_s3 + $0x8] sm:$0xff]  ;;  %v48_v2 = vperm.slane %v46_v63, 0  ;;  %v49_v3 = vperm.slane %v46_v63, 1  ;;  %v553_v4 = vld [vmem:[%s806_s3] sm:$0xff] }
  0x19   :  { %151 = vmatpush.bf16.msra.mxu1 %v432_v35  ;;  %343 = vmatpush.bf16.msra.mxu3 %v567_v54  ;;  %v562_v1 = vld [vmem:[%s806_s3 + $0x48] sm:$0xff]  ;;  %v561_v5 = vld [vmem:[%s806_s3 + $0x40] sm:$0xff] }
  0x1a   :  { %v572_v53 = vld [vmem:[%s807_s4] ss:$0 sm:$0xff]  ;;  %s611_s4 = smov [#allocation3]  }
  0x1b   :  { %s395_s16 = sshll.u32 %s611_s4, 4  ;;  %s396_s16 = int_to_ptr.vmem [resolvable:$true] %s395_s16 }
  0x1c   :  { %138 = vmatpush.bf16.msra.mxu0 %v420_v40  ;;  %330 = vmatpush.bf16.msra.mxu2 %v558_v55 }
  0x1d   :  { %152 = vmatpush.bf16.msra.mxu1 %v424_v41  ;;  %344 = vmatpush.bf16.msra.mxu3 %v566_v56 }
  0x20   :  { %139 = vmatpush.bf16.msra.mxu0 %v412_v46  ;;  %331 = vmatpush.bf16.msra.mxu2 %v557_v57 }
  0x21   :  { %153 = vmatpush.bf16.msra.mxu1 %v416_v49  ;;  %345 = vmatpush.bf16.msra.mxu3 %v565_v58 }
  0x23   :  { %140 = vmatmul.bf16.vlgmr.msra.gmra.mxu0 %v29_v50 }
  0x24   :  { %154 = vmatmul.bf16.vlgmr.msra.gmra.mxu1 %v29_v50  ;;  %332 = vmatpush.bf16.msra.mxu2 %v556_v59 }
  0x25   :  { %346 = vmatpush.bf16.msra.mxu3 %v564_v60 }
  0x28   :  { %333 = vmatpush.bf16.msra.mxu2 %v555_v61 }
  0x29   :  { %347 = vmatpush.bf16.msra.mxu3 %v563_v62 }
  0x2c   :  { %334 = vmatpush.bf16.msra.mxu2 %v554_v0 }
  0x2d   :  { %348 = vmatpush.bf16.msra.mxu3 %v562_v1 }
  0x30   :  { %335 = vmatpush.bf16.msra.mxu2 %v553_v4 }
  0x31   :  { %349 = vmatpush.bf16.msra.mxu3 %v561_v5 }
  0xa0   :  { %v141_v6 = vpop.f32.mrf.mxu0 }
  0xa1   :  { %v142_v7 = vadd.f32 %v141_v6, %v48_v2  ;;  %v155_v8 = vpop.f32.mrf.mxu1 }
  0xa2   :  { %v156_v9 = vadd.f32 %v155_v8, %v49_v3 }
  0xa3   :  { %v160_v10 = vmul.f32 %v142_v7, %v142_v7 }
  0xa4   :  { %v161_v11 = vmul.f32 %v156_v9, %v156_v9 }
  0xa5   :  { %v164_v12 = vmul.f32 %v160_v10, %v142_v7 }
  0xa6   :  { %v165_v13 = vmul.f32 %v161_v11, %v156_v9 }
  0xa7   :  { %v168_v14 = vmul.f32 0.044715, %v164_v12 }
  0xa8   :  { %v169_v15 = vmul.f32 0.044715, %v165_v13  ;;  %v143_v16 = vpop.f32.mrf.mxu0 }
  0xa9   :  { %v172_v17 = vadd.f32 %v168_v14, %v142_v7  ;;  %v144_v18 = vadd.f32 %v143_v16, %v48_v2  ;;  %v157_v19 = vpop.f32.mrf.mxu1 }
  0xaa   :  { %v173_v20 = vadd.f32 %v169_v15, %v156_v9  ;;  %v158_v21 = vadd.f32 %v157_v19, %v49_v3 }
  0xab   :  { %v162_v22 = vmul.f32 %v144_v18, %v144_v18  ;;  %v176_v23 = vmul.f32 0.7978846, %v172_v17 }
  0xac   :  { %v163_v24 = vmul.f32 %v158_v21, %v158_v21  ;;  %v177_v25 = vmul.f32 0.7978846, %v173_v20 }
  0xad   :  { %v166_v26 = vmul.f32 %v162_v22, %v144_v18  ;;  %573 = vtanh.f32 %v176_v23 }
  0xae   :  { %v167_v27 = vmul.f32 %v163_v24, %v158_v21  ;;  %575 = vtanh.f32 %v177_v25 }
  0xaf   :  { %v170_v28 = vmul.f32 0.044715, %v166_v26 }
  0xb0   :  { %v171_v29 = vmul.f32 0.044715, %v167_v27 }
  0xb1   :  { %v174_v30 = vadd.f32 %v170_v28, %v144_v18 }
  0xb2   :  { %v175_v31 = vadd.f32 %v171_v29, %v158_v21 }
  0xb3   :  { %v178_v32 = vmul.f32 0.7978846, %v174_v30  ;;  %v574_v34 = vpop.eup %573 }
  0xb4   :  { %v179_v33 = vmul.f32 0.7978846, %v175_v31  ;;  %v576_v35 = vpop.eup %575  ;;  %v184_v36 = vadd.f32 1.0, %v574_v34 }
  0xb5   :  { %577 = vtanh.f32 %v178_v32  ;;  %v185_v37 = vadd.f32 1.0, %v576_v35 }
  0xb6   :  { %579 = vtanh.f32 %v179_v33  ;;  %v188_v41 = vmul.f32 0.5, %v184_v36 }
  0xb7   :  { %v189_v43 = vmul.f32 0.5, %v185_v37 }
  0xb8   :  { %v192_v46 = vmul.f32 %v188_v41, %v142_v7 }
  0xb9   :  { %v193_v48 = vmul.f32 %v189_v43, %v156_v9 }
  0xbb   :  { %v578_v38 = vpop.eup %577 }
  0xbc   :  { %v580_v39 = vpop.eup %579  ;;  %v186_v40 = vadd.f32 1.0, %v578_v38 }
  0xbd   :  { %v187_v42 = vadd.f32 1.0, %v580_v39 }
  0xbe   :  { %v190_v44 = vmul.f32 0.5, %v186_v40 }
  0xbf   :  { %v191_v45 = vmul.f32 0.5, %v187_v42 }
  0xc0   :  { %v194_v47 = vmul.f32 %v190_v44, %v144_v18 }
  0xc1   :  { %v195_v49 = vmul.f32 %v191_v45, %v158_v21 }
  0xc2   :  { %v198_v50 = vpack.c.bf16 %v194_v47, %v192_v46 }
  0xc3   :  { %v199_v51 = vpack.c.bf16 %v195_v49, %v193_v48 }
  0xc4   :  { %336 = vmatmul.bf16.vlgmr.msra.gmra.mxu2 %v198_v50 }
  0xc5   :  { %350 = vmatmul.bf16.vlgmr.msra.gmra.mxu3 %v199_v51 }
 0x147   :  { %v337_v52 = vpop.f32.mrf.mxu2 }
 0x148   :  { %v351_v54 = vpop.f32.mrf.mxu3 }
 0x149   :  { %v352_v55 = vadd.f32 %v351_v54, %v337_v52 }
 0x14b   :  { %v369_v56 = vadd.f32 %v572_v53, %v352_v55 }
 0x14d   :  { %v371_v57 = vmul.f32 %v369_v56, %v369_v56 }
 0x14f   :  { %v373_v58 = vmul.f32 %v371_v57, %v369_v56  ;;  %v339_v59 = vpop.f32.mrf.mxu2 }
 0x150   :  { %v353_v60 = vpop.f32.mrf.mxu3 }
 0x151   :  { %v375_v61 = vmul.f32 0.044715, %v373_v58  ;;  %v354_v62 = vadd.f32 %v353_v60, %v339_v59 }
 0x153   :  { %v377_v63 = vadd.f32 %v375_v61, %v369_v56  ;;  %v370_v0 = vadd.f32 %v572_v53, %v354_v62 }
 0x155   :  { %v379_v1 = vmul.f32 0.7978846, %v377_v63  ;;  %v372_v2 = vmul.f32 %v370_v0, %v370_v0 }
 0x157   :  { %581 = vtanh.f32 %v379_v1  ;;  %v374_v3 = vmul.f32 %v372_v2, %v370_v0 }
 0x159   :  { %v376_v4 = vmul.f32 0.044715, %v374_v3 }
 0x15b   :  { %v378_v5 = vadd.f32 %v376_v4, %v370_v0 }
 0x15d   :  { %v582_v6 = vpop.eup %581  ;;  %v380_v7 = vmul.f32 0.7978846, %v378_v5 }
 0x15e   :  { %v383_v8 = vadd.f32 1.0, %v582_v6 }
 0x15f   :  { %583 = vtanh.f32 %v380_v7 }
 0x160   :  { %v385_v9 = vmul.f32 0.5, %v383_v8 }
 0x162   :  { %v387_v10 = vmul.f32 %v385_v9, %v369_v56 }
 0x164   :  { %389 = vst [vmem:[#allocation3] sm:$0xff] %v387_v10 }
 0x165   :  { %v584_v11 = vpop.eup %583 }
 0x166   :  { %v384_v12 = vadd.f32 1.0, %v584_v11 }
 0x168   :  { %v386_v13 = vmul.f32 0.5, %v384_v12 }
 0x16a   :  { %v388_v14 = vmul.f32 %v386_v13, %v370_v0 }
 0x16c   :  { %390 = vst [vmem:[#allocation3 + $0x8] sm:$0xff] %v388_v14 }
 0x16d   :  { %403 = dma.vmem_to_hbm [thread:$0]  %s396_s16, 256, %s398_s19, [#allocation4], %s612_s20, %s612_s20, %s613_s21  }
 0x16e   :  { %609 = dma.done.wait [#allocation4], 256  }
 0x16f   :  { %610 = vsyncadd [#allocation4], 4294967040 }
 0x170   :  { %408 = vsyncpa [#allocation4], 1 }

// kernel: mlp_forward.1
= control target key start
LH: loop header
LB: loop body
LE: loop exit
PB: predicated region body
PF: predicated region fallthrough
CT: control target
= control target key end

     0   :  { %s803_s0 = inlined_call_operand.vmem [shape: f32[16,128], index: 0, kind: input, shape index: {}]   ;;  %s804_s1 = inlined_call_operand.vmem [shape: bf16[128,256], index: 1, kind: input, shape index: {}]   ;;  %s805_s2 = inlined_call_operand.vmem [shape: f32[1,256], index: 2, kind: input, shape index: {}]   ;;  %s806_s3 = inlined_call_operand.vmem [shape: bf16[256,128], index: 3, kind: input, shape index: {}]   ;;  %s807_s4 = inlined_call_operand.vmem [shape: f32[1,128], index: 4, kind: input, shape index: {}]   ;;  %s808_s5 = inlined_call_operand.hbm [shape: f32[16,128], index: 5, kind: output, shape index: {}]  }
   0x1   :  { %v467_v0 = vld [vmem:[%s804_s1 + $0x70] sm:$0xf]  ;;  %v552_v1 = vld [vmem:[%s804_s1 + $0x74] sm:$0xf0]  ;;  %v551_v2 = vld [vmem:[%s804_s1 + $0x74] sm:$0xf] }
   0x2   :  { %v468_v3 = vor.u32 %v552_v1, %v467_v0  ;;  %v469_v4 = vld [vmem:[%s804_s1 + $0x78] sm:$0xf0]  ;;  %v459_v5 = vld [vmem:[%s804_s1 + $0x60] sm:$0xf]  ;;  %v550_v6 = vld [vmem:[%s804_s1 + $0x64] sm:$0xf0] }
   0x3   :  { %v472_v7 = vor.u32 %v551_v2, %v469_v4  ;;  %v549_v8 = vld [vmem:[%s804_s1 + $0x64] sm:$0xf]  ;;  %v461_v9 = vld [vmem:[%s804_s1 + $0x68] sm:$0xf0]  ;;  %v460_v10 = vor.u32 %v550_v6, %v459_v5  ;;  %v451_v12 = vld [vmem:[%s804_s1 + $0x50] sm:$0xf] }
   0x4   :  { %132 = vmatpush.bf16.msra.mxu0 %v468_v3  ;;  %v464_v11 = vor.u32 %v549_v8, %v461_v9  ;;  %v548_v13 = vld [vmem:[%s804_s1 + $0x54] sm:$0xf0]  ;;  %v547_v14 = vld [vmem:[%s804_s1 + $0x54] sm:$0xf]  ;;  %v453_v15 = vld [vmem:[%s804_s1 + $0x58] sm:$0xf0] }
   0x5   :  { %146 = vmatpush.bf16.msra.mxu1 %v472_v7  ;;  %v452_v16 = vor.u32 %v548_v13, %v451_v12  ;;  %v456_v17 = vor.u32 %v547_v14, %v453_v15  ;;  %v443_v18 = vld [vmem:[%s804_s1 + $0x40] sm:$0xf]  ;;  %v546_v19 = vld [vmem:[%s804_s1 + $0x44] sm:$0xf0]  ;;  %v545_v20 = vld [vmem:[%s804_s1 + $0x44] sm:$0xf] }
   0x6   :  { %v445_v21 = vld [vmem:[%s804_s1 + $0x48] sm:$0xf0]  ;;  %v444_v22 = vor.u32 %v546_v19, %v443_v18  ;;  %v435_v24 = vld [vmem:[%s804_s1 + $0x30] sm:$0xf]  ;;  %v544_v25 = vld [vmem:[%s804_s1 + $0x34] sm:$0xf0] }
   0x7   :  { %v448_v23 = vor.u32 %v545_v20, %v445_v21 }
   0x8   :  { %133 = vmatpush.bf16.msra.mxu0 %v460_v10 }
   0x9   :  { %147 = vmatpush.bf16.msra.mxu1 %v464_v11 }
   0xc   :  { %134 = vmatpush.bf16.msra.mxu0 %v452_v16 }
   0xd   :  { %148 = vmatpush.bf16.msra.mxu1 %v456_v17 }
   0xe   :  { %10 = vsyncpa [#allocation4], 0  ;;  %v543_v26 = vld [vmem:[%s804_s1 + $0x34] sm:$0xf]  ;;  %v437_v27 = vld [vmem:[%s804_s1 + $0x38] sm:$0xf0]  ;;  %v436_v28 = vor.u32 %v544_v25, %v435_v24 }
   0xf   :  { %v440_v29 = vor.u32 %v543_v26, %v437_v27  ;;  %v427_v30 = vld [vmem:[%s804_s1 + $0x20] sm:$0xf]  ;;  %v542_v31 = vld [vmem:[%s804_s1 + $0x24] sm:$0xf0]  ;;  %v541_v32 = vld [vmem:[%s804_s1 + $0x24] sm:$0xf] }
  0x10   :  { %135 = vmatpush.bf16.msra.mxu0 %v444_v22  ;;  %v429_v33 = vld [vmem:[%s804_s1 + $0x28] sm:$0xf0]  ;;  %v428_v34 = vor.u32 %v542_v31, %v427_v30  ;;  %v419_v36 = vld [vmem:[%s804_s1 + $0x10] sm:$0xf]  ;;  %v540_v37 = vld [vmem:[%s804_s1 + $0x14] sm:$0xf0] }
  0x11   :  { %149 = vmatpush.bf16.msra.mxu1 %v448_v23  ;;  %v432_v35 = vor.u32 %v541_v32, %v429_v33  ;;  %v539_v38 = vld [vmem:[%s804_s1 + $0x14] sm:$0xf]  ;;  %v421_v39 = vld [vmem:[%s804_s1 + $0x18] sm:$0xf0]  ;;  %v420_v40 = vor.u32 %v540_v37, %v419_v36  ;;  %v411_v42 = vld [vmem:[%s804_s1] sm:$0xf] }
  0x12   :  { %v424_v41 = vor.u32 %v539_v38, %v421_v39  ;;  %v538_v43 = vld [vmem:[%s804_s1 + $0x4] sm:$0xf0]  ;;  %v537_v44 = vld [vmem:[%s804_s1 + $0x4] sm:$0xf]  ;;  %v413_v45 = vld [vmem:[%s804_s1 + $0x8] sm:$0xf0] }
  0x13   :  { %v412_v46 = vor.u32 %v538_v43, %v411_v42  ;;  %v27_v47 = vld [vmem:[%s803_s0] sm:$0xff]  ;;  %v28_v48 = vld [vmem:[%s803_s0 + $0x8] sm:$0xff]  ;;  %v416_v49 = vor.u32 %v537_v44, %v413_v45  ;;  %v560_v51 = vld [vmem:[%s806_s3 + $0x38] sm:$0xff]  ;;  %s397_s19 = sshll.u32 %s808_s5, 4  ;;  %s612_s20 = smov 128   ;;  %s398_s19 = int_to_ptr.hbm [resolvable:$true] %s397_s19 }
  0x14   :  { %136 = vmatpush.bf16.msra.mxu0 %v436_v28  ;;  %v29_v50 = vpack.c.bf16 %v28_v48, %v27_v47  ;;  %v568_v52 = vld [vmem:[%s806_s3 + $0x78] sm:$0xff]  ;;  %328 = vmatpush.bf16.msra.mxu2 %v560_v51  ;;  %v559_v53 = vld [vmem:[%s806_s3 + $0x30] sm:$0xff]  ;;  %v558_v55 = vld [vmem:[%s806_s3 + $0x28] sm:$0xff]  ;;  %s613_s21 = smov 8  }
  0x15   :  { %150 = vmatpush.bf16.msra.mxu1 %v440_v29  ;;  %342 = vmatpush.bf16.msra.mxu3 %v568_v52  ;;  %v567_v54 = vld [vmem:[%s806_s3 + $0x70] sm:$0xff]  ;;  %v566_v56 = vld [vmem:[%s806_s3 + $0x68] sm:$0xff]  ;;  %v557_v57 = vld [vmem:[%s806_s3 + $0x20] sm:$0xff] }
  0x16   :  { %v565_v58 = vld [vmem:[%s806_s3 + $0x60] sm:$0xff]  ;;  %v556_v59 = vld [vmem:[%s806_s3 + $0x18] sm:$0xff]  ;;  %v555_v61 = vld [vmem:[%s806_s3 + $0x10] sm:$0xff] }
  0x17   :  { %v564_v60 = vld [vmem:[%s806_s3 + $0x58] sm:$0xff]  ;;  %v563_v62 = vld [vmem:[%s806_s3 + $0x50] sm:$0xff]  ;;  %v46_v63 = vld [vmem:[%s805_s2] sm:$0x3] }
  0x18   :  { %137 = vmatpush.bf16.msra.mxu0 %v428_v34  ;;  %329 = vmatpush.bf16.msra.mxu2 %v559_v53  ;;  %v554_v0 = vld [vmem:[%s806_s3 + $0x8] sm:$0xff]  ;;  %v48_v2 = vperm.slane %v46_v63, 0  ;;  %v49_v3 = vperm.slane %v46_v63, 1  ;;  %v553_v4 = vld [vmem:[%s806_s3] sm:$0xff] }
  0x19   :  { %151 = vmatpush.bf16.msra.mxu1 %v432_v35  ;;  %343 = vmatpush.bf16.msra.mxu3 %v567_v54  ;;  %v562_v1 = vld [vmem:[%s806_s3 + $0x48] sm:$0xff]  ;;  %v561_v5 = vld [vmem:[%s806_s3 + $0x40] sm:$0xff] }
  0x1a   :  { %v572_v53 = vld [vmem:[%s807_s4] ss:$0 sm:$0xff]  ;;  %s611_s4 = smov [#allocation3]  }
  0x1b   :  { %s395_s16 = sshll.u32 %s611_s4, 4  ;;  %s396_s16 = int_to_ptr.vmem [resolvable:$true] %s395_s16 }
  0x1c   :  { %138 = vmatpush.bf16.msra.mxu0 %v420_v40  ;;  %330 = vmatpush.bf16.msra.mxu2 %v558_v55 }
  0x1d   :  { %152 = vmatpush.bf16.msra.mxu1 %v424_v41  ;;  %344 = vmatpush.bf16.msra.mxu3 %v566_v56 }
  0x20   :  { %139 = vmatpush.bf16.msra.mxu0 %v412_v46  ;;  %331 = vmatpush.bf16.msra.mxu2 %v557_v57 }
  0x21   :  { %153 = vmatpush.bf16.msra.mxu1 %v416_v49  ;;  %345 = vmatpush.bf16.msra.mxu3 %v565_v58 }
  0x23   :  { %140 = vmatmul.bf16.vlgmr.msra.gmra.mxu0 %v29_v50 }
  0x24   :  { %154 = vmatmul.bf16.vlgmr.msra.gmra.mxu1 %v29_v50  ;;  %332 = vmatpush.bf16.msra.mxu2 %v556_v59 }
  0x25   :  { %346 = vmatpush.bf16.msra.mxu3 %v564_v60 }
  0x28   :  { %333 = vmatpush.bf16.msra.mxu2 %v555_v61 }
  0x29   :  { %347 = vmatpush.bf16.msra.mxu3 %v563_v62 }
  0x2c   :  { %334 = vmatpush.bf16.msra.mxu2 %v554_v0 }
  0x2d   :  { %348 = vmatpush.bf16.msra.mxu3 %v562_v1 }
  0x30   :  { %335 = vmatpush.bf16.msra.mxu2 %v553_v4 }
  0x31   :  { %349 = vmatpush.bf16.msra.mxu3 %v561_v5 }
  0xa0   :  { %v141_v6 = vpop.f32.mrf.mxu0 }
  0xa1   :  { %v142_v7 = vadd.f32 %v141_v6, %v48_v2  ;;  %v155_v8 = vpop.f32.mrf.mxu1 }
  0xa2   :  { %v156_v9 = vadd.f32 %v155_v8, %v49_v3 }
  0xa3   :  { %v160_v10 = vmul.f32 %v142_v7, %v142_v7 }
  0xa4   :  { %v161_v11 = vmul.f32 %v156_v9, %v156_v9 }
  0xa5   :  { %v164_v12 = vmul.f32 %v160_v10, %v142_v7 }
  0xa6   :  { %v165_v13 = vmul.f32 %v161_v11, %v156_v9 }
  0xa7   :  { %v168_v14 = vmul.f32 0.044715, %v164_v12 }
  0xa8   :  { %v169_v15 = vmul.f32 0.044715, %v165_v13  ;;  %v143_v16 = vpop.f32.mrf.mxu0 }
  0xa9   :  { %v172_v17 = vadd.f32 %v168_v14, %v142_v7  ;;  %v144_v18 = vadd.f32 %v143_v16, %v48_v2  ;;  %v157_v19 = vpop.f32.mrf.mxu1 }
  0xaa   :  { %v173_v20 = vadd.f32 %v169_v15, %v156_v9  ;;  %v158_v21 = vadd.f32 %v157_v19, %v49_v3 }
  0xab   :  { %v162_v22 = vmul.f32 %v144_v18, %v144_v18  ;;  %v176_v23 = vmul.f32 0.7978846, %v172_v17 }
  0xac   :  { %v163_v24 = vmul.f32 %v158_v21, %v158_v21  ;;  %v177_v25 = vmul.f32 0.7978846, %v173_v20 }
  0xad   :  { %v166_v26 = vmul.f32 %v162_v22, %v144_v18  ;;  %573 = vtanh.f32 %v176_v23 }
  0xae   :  { %v167_v27 = vmul.f32 %v163_v24, %v158_v21  ;;  %575 = vtanh.f32 %v177_v25 }
  0xaf   :  { %v170_v28 = vmul.f32 0.044715, %v166_v26 }
  0xb0   :  { %v171_v29 = vmul.f32 0.044715, %v167_v27 }
  0xb1   :  { %v174_v30 = vadd.f32 %v170_v28, %v144_v18 }
  0xb2   :  { %v175_v31 = vadd.f32 %v171_v29, %v158_v21 }
  0xb3   :  { %v178_v32 = vmul.f32 0.7978846, %v174_v30  ;;  %v574_v34 = vpop.eup %573 }
  0xb4   :  { %v179_v33 = vmul.f32 0.7978846, %v175_v31  ;;  %v576_v35 = vpop.eup %575  ;;  %v184_v36 = vadd.f32 1.0, %v574_v34 }
  0xb5   :  { %577 = vtanh.f32 %v178_v32  ;;  %v185_v37 = vadd.f32 1.0, %v576_v35 }
  0xb6   :  { %579 = vtanh.f32 %v179_v33  ;;  %v188_v41 = vmul.f32 0.5, %v184_v36 }
  0xb7   :  { %v189_v43 = vmul.f32 0.5, %v185_v37 }
  0xb8   :  { %v192_v46 = vmul.f32 %v188_v41, %v142_v7 }
  0xb9   :  { %v193_v48 = vmul.f32 %v189_v43, %v156_v9 }
  0xbb   :  { %v578_v38 = vpop.eup %577 }
  0xbc   :  { %v580_v39 = vpop.eup %579  ;;  %v186_v40 = vadd.f32 1.0, %v578_v38 }
  0xbd   :  { %v187_v42 = vadd.f32 1.0, %v580_v39 }
  0xbe   :  { %v190_v44 = vmul.f32 0.5, %v186_v40 }
  0xbf   :  { %v191_v45 = vmul.f32 0.5, %v187_v42 }
  0xc0   :  { %v194_v47 = vmul.f32 %v190_v44, %v144_v18 }
  0xc1   :  { %v195_v49 = vmul.f32 %v191_v45, %v158_v21 }
  0xc2   :  { %v198_v50 = vpack.c.bf16 %v194_v47, %v192_v46 }
  0xc3   :  { %v199_v51 = vpack.c.bf16 %v195_v49, %v193_v48 }
  0xc4   :  { %336 = vmatmul.bf16.vlgmr.msra.gmra.mxu2 %v198_v50 }
  0xc5   :  { %350 = vmatmul.bf16.vlgmr.msra.gmra.mxu3 %v199_v51 }
 0x147   :  { %v337_v52 = vpop.f32.mrf.mxu2 }
 0x148   :  { %v351_v54 = vpop.f32.mrf.mxu3 }
 0x149   :  { %v352_v55 = vadd.f32 %v351_v54, %v337_v52 }
 0x14b   :  { %v369_v56 = vadd.f32 %v572_v53, %v352_v55 }
 0x14d   :  { %v371_v57 = vmul.f32 %v369_v56, %v369_v56 }
 0x14f   :  { %v373_v58 = vmul.f32 %v371_v57, %v369_v56  ;;  %v339_v59 = vpop.f32.mrf.mxu2 }
 0x150   :  { %v353_v60 = vpop.f32.mrf.mxu3 }
 0x151   :  { %v375_v61 = vmul.f32 0.044715, %v373_v58  ;;  %v354_v62 = vadd.f32 %v353_v60, %v339_v59 }
 0x153   :  { %v377_v63 = vadd.f32 %v375_v61, %v369_v56  ;;  %v370_v0 = vadd.f32 %v572_v53, %v354_v62 }
 0x155   :  { %v379_v1 = vmul.f32 0.7978846, %v377_v63  ;;  %v372_v2 = vmul.f32 %v370_v0, %v370_v0 }
 0x157   :  { %581 = vtanh.f32 %v379_v1  ;;  %v374_v3 = vmul.f32 %v372_v2, %v370_v0 }
 0x159   :  { %v376_v4 = vmul.f32 0.044715, %v374_v3 }
 0x15b   :  { %v378_v5 = vadd.f32 %v376_v4, %v370_v0 }
 0x15d   :  { %v582_v6 = vpop.eup %581  ;;  %v380_v7 = vmul.f32 0.7978846, %v378_v5 }
 0x15e   :  { %v383_v8 = vadd.f32 1.0, %v582_v6 }
 0x15f   :  { %583 = vtanh.f32 %v380_v7 }
 0x160   :  { %v385_v9 = vmul.f32 0.5, %v383_v8 }
 0x162   :  { %v387_v10 = vmul.f32 %v385_v9, %v369_v56 }
 0x164   :  { %389 = vst [vmem:[#allocation3] sm:$0xff] %v387_v10 }
 0x165   :  { %v584_v11 = vpop.eup %583 }
 0x166   :  { %v384_v12 = vadd.f32 1.0, %v584_v11 }
 0x168   :  { %v386_v13 = vmul.f32 0.5, %v384_v12 }
 0x16a   :  { %v388_v14 = vmul.f32 %v386_v13, %v370_v0 }
 0x16c   :  { %390 = vst [vmem:[#allocation3 + $0x8] sm:$0xff] %v388_v14 }
 0x16d   :  { %403 = dma.vmem_to_hbm [thread:$0]  %s396_s16, 256, %s398_s19, [#allocation4], %s612_s20, %s612_s20, %s613_s21  }
 0x16e   :  { %609 = dma.done.wait [#allocation4], 256  }
 0x16f   :  { %610 = vsyncadd [#allocation4], 4294967040 }
 0x170   :  { %408 = vsyncpa [#allocation4], 1 }

</bundles_post_ra>
